<compile_context>
chip_gen: v6e
topology: v6e:2x2x1
jax: 0.10.0
libtpu: 0.0.40
codegen_flags: <defaults>
</compile_context>

<pallas_src>
import functools
import math

import jax
import jax.numpy as jnp
from jax.experimental import pallas as pl
from jax.experimental.pallas import tpu as pltpu

LANES = 128
MAX_TILE_ROWS = 2048          # 2 inputs x 2 bufs x <=1 MiB = <=4 MiB VMEM
CHUNK_ROWS = 256              # inner sub-chunk: 256x128 f32 = 128 KiB / temp
NCORES = 2                    # parallel axis; shards across v7x's 2 TCs
SMOOTH = 1e-6
LOG_SMOOTH = math.log(SMOOTH)           # log(clip lower bound)
LOG_1M_SMOOTH = math.log1p(-SMOOTH)     # log(clip upper bound)


def _focal_sums_kernel(x_ref, t_ref, o_ref, *, gamma, ignore_index,
                       chunk_rows, n_full_chunks, rem_rows):
    @pl.when(pl.program_id(1) == 0)
    def _():
        o_ref[...] = jnp.zeros_like(o_ref)

    def partial_sums(x, t):
        # x: (r,128) f32, t: (r,128) native dtype.  Padding carries a target
        # sentinel not in {0, 1, ignore_index}, so both masks are 0 there.
        pos_mask = (t == 1).astype(jnp.float32)
        neg_mask = (t == 0).astype(jnp.float32)
        if ignore_index is not None:
            valid = (t != ignore_index).astype(jnp.float32)
            pos_mask = pos_mask * valid
            neg_mask = neg_mask * valid

        # Fused sigmoid/log-sigmoid from a single exp + log1p (no inf temp):
        #   log_sigmoid(x)  = min(x, 0)  - log1p(exp(-|x|))
        #   log_sigmoid(-x) = min(-x, 0) - log1p(exp(-|x|))
        e = jnp.exp(-jnp.abs(x))                    # EUP
        l1p = jnp.log1p(e)                          # EUP
        logsig_x = jnp.minimum(x, 0.0) - l1p        # log sigmoid(x)
        logsig_nx = jnp.minimum(-x, 0.0) - l1p      # log sigmoid(-x)

        # log(clip(sigmoid(x), S, 1-S)) == clip(log_sigmoid(x), logS, log1mS)
        clog_p = jnp.clip(logsig_x, LOG_SMOOTH, LOG_1M_SMOOTH)
        clog_q = jnp.clip(logsig_nx, LOG_SMOOTH, LOG_1M_SMOOTH)

        # prob^gamma and (1-prob)^gamma via EUP exp of the clipped log-sigmoids
        # (gamma * clog constant-folds; works for any gamma, incl. gamma==2).
        pos_w = pos_mask * jnp.exp(gamma * clog_q)   # (1 - prob)^gamma
        neg_w = neg_mask * jnp.exp(gamma * clog_p)   # prob^gamma

        def rsum(v):
            # (r,128)->(r/8,8,128): axis-0 reduce is pure VPU vreg adds; the
            # cross-lane/sublane collapse happens once in the scalar glue.
            return jnp.sum(v.reshape(-1, 8, LANES), axis=0)

        return (rsum(pos_w * clog_p),      # sum(pos_w * log(prob))
                rsum(pos_w),               # sum(pos_w)
                rsum(neg_w * logsig_nx),   # sum(neg_w * log_sigmoid(-x))
                rsum(neg_w))               # sum(neg_w)

    def chunk_at(r0, nrows, carry):
        x = x_ref[pl.ds(r0, nrows), :].astype(jnp.float32)
        t = t_ref[pl.ds(r0, nrows), :]
        p = partial_sums(x, t)
        return tuple(a + b for a, b in zip(carry, p))

    zero = jnp.zeros((8, LANES), jnp.float32)
    accs = (zero, zero, zero, zero)

    if n_full_chunks == 1:
        accs = chunk_at(0, chunk_rows, accs)
    elif n_full_chunks > 1:
        def body(c, carry):
            r0 = pl.multiple_of(c * chunk_rows, chunk_rows)
            return chunk_at(r0, chunk_rows, carry)
        accs = jax.lax.fori_loop(0, n_full_chunks, body, accs, unroll=2)
    if rem_rows:
        accs = chunk_at(n_full_chunks * chunk_rows, rem_rows, accs)

    for k, v in enumerate(accs):
        o_ref[0, k, :, :] += v


def _pick_sentinel(ignore_index):
    """A small integer that is not 0, not 1 and not ignore_index."""
    for cand in (2, 3):
        if ignore_index is None or cand != ignore_index:
            return cand
    return 4


def binary_focal_loss(output, target, *, alpha=3.0, gamma=2.0,
                      ignore_index=None, reduction='mean'):
    """Matches BinaryFocalLoss.forward (loss is scalar regardless of reduction)."""
    assert reduction in ('none', 'mean', 'sum')
    n = int(output.size)
    assert int(target.size) == n

    if target.dtype == jnp.bool_:
        # TODO(synk): bool targets cannot represent the padding sentinel; this
        # upcast is one extra HBM pass — pass int8/float targets to avoid it.
        target = target.astype(jnp.int8)

    rows = -(-n // LANES)
    rows8 = ((rows + 7) // 8) * 8

    # One core unless more than one max-size tile of work exists (avoids a
    # fully-padded second-core tile on small inputs; v7x still gets both TCs
    # on large inputs).
    ncores = NCORES if rows8 > MAX_TILE_ROWS else 1
    steps = -(-rows8 // (ncores * MAX_TILE_ROWS))
    tile_rows = min(MAX_TILE_ROWS,
                    ((-(-rows8 // (ncores * steps)) + 7) // 8) * 8)
    rows_padded = ncores * steps * tile_rows
    pad = rows_padded * LANES - n

    x = jnp.ravel(output)
    t = jnp.ravel(target)
    if pad:
        # Sentinel-valued target padding: t==1 / t==0 are both false on the
        # tail, so it contributes nothing — no in-kernel index mask needed.
        sentinel = _pick_sentinel(ignore_index)
        x = jnp.pad(x, (0, pad))
        t = jnp.pad(t, (0, pad), constant_values=sentinel)
    x2 = x.reshape(rows_padded, LANES)
    t2 = t.reshape(rows_padded, LANES)

    chunk_rows = min(CHUNK_ROWS, tile_rows)
    n_full = tile_rows // chunk_rows
    rem = tile_rows - n_full * chunk_rows          # multiple of 8

    kern = functools.partial(_focal_sums_kernel,
                             gamma=float(gamma),
                             ignore_index=ignore_index,
                             chunk_rows=chunk_rows,
                             n_full_chunks=n_full,
                             rem_rows=rem)

    sums = pl.pallas_call(
        kern,
        out_shape=jax.ShapeDtypeStruct((ncores, 4, 8, LANES), jnp.float32),
        grid_spec=pltpu.PrefetchScalarGridSpec(
            num_scalar_prefetch=0,
            grid=(ncores, steps),
            in_specs=[
                pl.BlockSpec((tile_rows, LANES),
                             lambda c, i: (c * steps + i, 0)),
                pl.BlockSpec((tile_rows, LANES),
                             lambda c, i: (c * steps + i, 0)),
            ],
            out_specs=pl.BlockSpec((1, 4, 8, LANES),
                                   lambda c, i: (c, 0, 0, 0)),
        ),
        compiler_params=pltpu.CompilerParams(
            dimension_semantics=("parallel", "arbitrary")),
    )(x2, t2)

    s = jnp.sum(sums, axis=(0, 2, 3))           # (4,) scalar glue
    pos_loss = -s[0] / (s[1] + 0.0001)
    neg_loss = -alpha * s[2] / (s[3] + 0.0001)
    return pos_loss + neg_loss


def _reference_loss(output, target, *, alpha=3.0, gamma=2.0, ignore_index=None):
    x = output.astype(jnp.float32)
    prob = jnp.clip(jax.nn.sigmoid(x), SMOOTH, 1.0 - SMOOTH)
    pos = (target == 1).astype(jnp.float32)
    neg = (target == 0).astype(jnp.float32)
    if ignore_index is not None:
        valid = (target != ignore_index).astype(jnp.float32)
        pos = pos * valid
        neg = neg * valid
    pw = pos * jnp.power(1.0 - prob, gamma)
    pos_loss = -jnp.sum(pw * jnp.log(prob)) / (jnp.sum(pw) + 0.0001)
    nw = neg * jnp.power(prob, gamma)
    neg_loss = -alpha * jnp.sum(nw * jax.nn.log_sigmoid(-x)) / (jnp.sum(nw) + 0.0001)
    return pos_loss + neg_loss


if __name__ == "__main__":
    key = jax.random.PRNGKey(0)
    k_out, k_tgt, k_out2, k_cls = jax.random.split(key, 4)

    # NCHW inputs, small shapes (like the segmentation module's logits/labels)
    B, C, H, W = 2, 4, 16, 16
    output = jax.random.normal(k_out, (B, C, H, W), dtype=jnp.float32) * 2.0
    target = jax.random.bernoulli(k_tgt, 0.3, (B, C, H, W)).astype(jnp.float32)

    # Module defaults: alpha=3, gamma=2, ignore_index=None, reduction='mean'
    loss = jax.block_until_ready(
        binary_focal_loss(output, target, alpha=3.0, gamma=2.0))
    ref = jax.block_until_ready(_reference_loss(output, target,
                                                alpha=3.0, gamma=2.0))
    assert jnp.isfinite(loss), "non-finite loss"
    assert jnp.allclose(loss, ref, rtol=3e-5, atol=1e-5), (loss, ref)

    # Non-default gamma exercises the general exp(gamma*log) weight path.
    loss_g = jax.block_until_ready(
        binary_focal_loss(output, target, alpha=2.0, gamma=3.0))
    ref_g = jax.block_until_ready(
        _reference_loss(output, target, alpha=2.0, gamma=3.0))
    assert jnp.isfinite(loss_g), "non-finite loss (gamma=3)"
    assert jnp.allclose(loss_g, ref_g, rtol=3e-5, atol=1e-5), (loss_g, ref_g)

    # Ragged size (exercises sentinel padding) + ignore_index path.
    shp = (2, 3, 17, 13)
    out3 = jax.random.normal(k_out2, shp, dtype=jnp.float32) * 2.0
    cls = jax.random.randint(k_cls, shp, 0, 3)
    tgt3 = jnp.where(cls == 2, 255.0, cls.astype(jnp.float32))
    loss_i = jax.block_until_ready(
        binary_focal_loss(out3, tgt3, alpha=3.0, gamma=2.0, ignore_index=255))
    ref_i = jax.block_until_ready(
        _reference_loss(out3, tgt3, alpha=3.0, gamma=2.0, ignore_index=255))
    assert jnp.isfinite(loss_i), "non-finite loss (ignore_index)"
    assert jnp.allclose(loss_i, ref_i, rtol=3e-5, atol=1e-5), (loss_i, ref_i)

    # Narrow dtypes end-to-end (bf16 logits + int32 targets, no wrapper casts).
    loss_n = jax.block_until_ready(
        binary_focal_loss(output.astype(jnp.bfloat16),
                          target.astype(jnp.int32)))
    ref_n = jax.block_until_ready(
        _reference_loss(output.astype(jnp.bfloat16),
                        target.astype(jnp.int32)))
    assert jnp.isfinite(loss_n), "non-finite loss (bf16/int32)"
    assert jnp.allclose(loss_n, ref_n, rtol=1e-4, atol=1e-4), (loss_n, ref_n)

    print("KERNEL_OK")
</pallas_src>

<mosaic_0001>
module attributes {stable_mosaic.version = 11 : i64} {
  func.func @_focal_sums_kernel(%arg0: i32, %arg1: i32, %arg2: memref<16x128xf32, #tpu.memory_space<vmem>>, %arg3: memref<16x128xf32, #tpu.memory_space<vmem>>, %arg4: memref<1x4x8x128xf32, #tpu.memory_space<vmem>>) attributes {dimension_semantics = [#tpu.dimension_semantics<parallel>, #tpu.dimension_semantics<arbitrary>], iteration_bounds = array<i64: 1, 1>, scalar_prefetch = 0 : i64, scratch_operands = 0 : i64, tpu.core_type = #tpu.core_type<tc>, window_params = [{transform_indices = @transform_0, window_bounds = array<i64: 16, 128>}, {transform_indices = @transform_1, window_bounds = array<i64: 16, 128>}, {transform_indices = @transform_2, window_bounds = array<i64: 1, 4, 8, 128>}]} {
    %c0_i32 = arith.constant 0 : i32
    %0 = arith.cmpi eq, %arg1, %c0_i32 : i32
    %1 = arith.extui %0 : i1 to i32
    %c0_i32_0 = arith.constant 0 : i32
    %2 = arith.cmpi ne, %1, %c0_i32_0 : i32
    scf.if %2 {
      %cst_49 = arith.constant 0.000000e+00 : f32
      %81 = vector.broadcast %cst_49 : f32 to vector<1x4x8x128xf32>
      %c0_50 = arith.constant 0 : index
      %c0_51 = arith.constant 0 : index
      %c0_52 = arith.constant 0 : index
      %c0_53 = arith.constant 0 : index
      %82 = vector.load %arg4[%c0_50, %c0_51, %c0_52, %c0_53] : memref<1x4x8x128xf32, #tpu.memory_space<vmem>>, vector<1x4x8x128xf32>
      tpu.vector_store %arg4[%c0_50, %c0_51, %c0_52, %c0_53], %81 {strides = array<i32>} : memref<1x4x8x128xf32, #tpu.memory_space<vmem>>, vector<1x4x8x128xf32>,
    } else {
    }
    %cst = arith.constant 0.000000e+00 : f32
    %3 = vector.broadcast %cst : f32 to vector<8x128xf32>
    %c0 = arith.constant 0 : index
    %c0_1 = arith.constant 0 : index
    %4 = vector.load %arg2[%c0, %c0_1] : memref<16x128xf32, #tpu.memory_space<vmem>>, vector<16x128xf32>
    %c0_2 = arith.constant 0 : index
    %c0_3 = arith.constant 0 : index
    %5 = vector.load %arg3[%c0_2, %c0_3] : memref<16x128xf32, #tpu.memory_space<vmem>>, vector<16x128xf32>
    %cst_4 = arith.constant 1.000000e+00 : f32
    %6 = vector.broadcast %cst_4 : f32 to vector<16x128xf32>
    %7 = arith.cmpf oeq, %5, %6 : vector<16x128xf32>
    %8 = arith.extui %7 : vector<16x128xi1> to vector<16x128xi32>
    %9 = arith.sitofp %8 : vector<16x128xi32> to vector<16x128xf32>
    %cst_5 = arith.constant 0.000000e+00 : f32
    %10 = vector.broadcast %cst_5 : f32 to vector<16x128xf32>
    %11 = arith.cmpf oeq, %5, %10 : vector<16x128xf32>
    %12 = arith.extui %11 : vector<16x128xi1> to vector<16x128xi32>
    %13 = arith.sitofp %12 : vector<16x128xi32> to vector<16x128xf32>
    %14 = math.absf %4 : vector<16x128xf32>
    %cst_6 = arith.constant 0.000000e+00 : f32
    %15 = vector.broadcast %cst_6 : f32 to vector<16x128xf32>
    %16 = arith.subf %15, %14 : vector<16x128xf32>
    %17 = math.exp %16 : vector<16x128xf32>
    %18 = math.log1p %17 : vector<16x128xf32>
    %cst_7 = arith.constant 0.000000e+00 : f32
    %19 = vector.broadcast %cst_7 : f32 to vector<16x128xf32>
    %20 = arith.minimumf %4, %19 : vector<16x128xf32>
    %21 = arith.subf %20, %18 : vector<16x128xf32>
    %cst_8 = arith.constant 0.000000e+00 : f32
    %22 = vector.broadcast %cst_8 : f32 to vector<16x128xf32>
    %23 = arith.subf %22, %4 : vector<16x128xf32>
    %cst_9 = arith.constant 0.000000e+00 : f32
    %24 = vector.broadcast %cst_9 : f32 to vector<16x128xf32>
    %25 = arith.minimumf %23, %24 : vector<16x128xf32>
    %26 = arith.subf %25, %18 : vector<16x128xf32>
    %cst_10 = arith.constant -13.8155107 : f32
    %cst_11 = arith.constant -1.00000045E-6 : f32
    %27 = vector.broadcast %cst_10 : f32 to vector<16x128xf32>
    %28 = arith.maximumf %27, %21 : vector<16x128xf32>
    %29 = vector.broadcast %cst_11 : f32 to vector<16x128xf32>
    %30 = arith.minimumf %29, %28 : vector<16x128xf32>
    %cst_12 = arith.constant -13.8155107 : f32
    %cst_13 = arith.constant -1.00000045E-6 : f32
    %31 = vector.broadcast %cst_12 : f32 to vector<16x128xf32>
    %32 = arith.maximumf %31, %26 : vector<16x128xf32>
    %33 = vector.broadcast %cst_13 : f32 to vector<16x128xf32>
    %34 = arith.minimumf %33, %32 : vector<16x128xf32>
    %cst_14 = arith.constant 2.000000e+00 : f32
    %35 = vector.broadcast %cst_14 : f32 to vector<16x128xf32>
    %36 = arith.mulf %35, %34 : vector<16x128xf32>
    %37 = math.exp %36 : vector<16x128xf32>
    %38 = arith.mulf %9, %37 : vector<16x128xf32>
    %cst_15 = arith.constant 2.000000e+00 : f32
    %39 = vector.broadcast %cst_15 : f32 to vector<16x128xf32>
    %40 = arith.mulf %39, %30 : vector<16x128xf32>
    %41 = math.exp %40 : vector<16x128xf32>
    %42 = arith.mulf %13, %41 : vector<16x128xf32>
    %43 = arith.mulf %38, %30 : vector<16x128xf32>
    %44 = vector.shape_cast %43 : vector<16x128xf32> to vector<2x8x128xf32>
    %cst_16 = arith.constant dense<0.000000e+00> : vector<8x128xf32>
    %45 = vector.multi_reduction <add>, %44, %cst_16 [0] : vector<2x8x128xf32> to vector<8x128xf32>
    %46 = vector.shape_cast %38 : vector<16x128xf32> to vector<2x8x128xf32>
    %cst_17 = arith.constant dense<0.000000e+00> : vector<8x128xf32>
    %47 = vector.multi_reduction <add>, %46, %cst_17 [0] : vector<2x8x128xf32> to vector<8x128xf32>
    %48 = arith.mulf %42, %26 : vector<16x128xf32>
    %49 = vector.shape_cast %48 : vector<16x128xf32> to vector<2x8x128xf32>
    %cst_18 = arith.constant dense<0.000000e+00> : vector<8x128xf32>
    %50 = vector.multi_reduction <add>, %49, %cst_18 [0] : vector<2x8x128xf32> to vector<8x128xf32>
    %51 = vector.shape_cast %42 : vector<16x128xf32> to vector<2x8x128xf32>
    %cst_19 = arith.constant dense<0.000000e+00> : vector<8x128xf32>
    %52 = vector.multi_reduction <add>, %51, %cst_19 [0] : vector<2x8x128xf32> to vector<8x128xf32>
    %53 = arith.addf %3, %45 : vector<8x128xf32>
    %54 = arith.addf %3, %47 : vector<8x128xf32>
    %55 = arith.addf %3, %50 : vector<8x128xf32>
    %56 = arith.addf %3, %52 : vector<8x128xf32>
    %c0_20 = arith.constant 0 : index
    %c0_21 = arith.constant 0 : index
    %c0_22 = arith.constant 0 : index
    %c0_23 = arith.constant 0 : index
    %57 = vector.load %arg4[%c0_20, %c0_21, %c0_22, %c0_23] : memref<1x4x8x128xf32, #tpu.memory_space<vmem>>, vector<1x1x8x128xf32>
    %58 = vector.shape_cast %57 : vector<1x1x8x128xf32> to vector<8x128xf32>
    %59 = arith.addf %58, %53 : vector<8x128xf32>
    %c0_24 = arith.constant 0 : index
    %c0_25 = arith.constant 0 : index
    %c0_26 = arith.constant 0 : index
    %c0_27 = arith.constant 0 : index
    %60 = vector.load %arg4[%c0_24, %c0_25, %c0_26, %c0_27] : memref<1x4x8x128xf32, #tpu.memory_space<vmem>>, vector<1x1x8x128xf32>
    %61 = vector.shape_cast %60 : vector<1x1x8x128xf32> to vector<8x128xf32>
    %62 = vector.shape_cast %59 : vector<8x128xf32> to vector<1x1x8x128xf32>
    tpu.vector_store %arg4[%c0_24, %c0_25, %c0_26, %c0_27], %62 {strides = array<i32>} : memref<1x4x8x128xf32, #tpu.memory_space<vmem>>, vector<1x1x8x128xf32>,
    %c0_28 = arith.constant 0 : index
    %c1 = arith.constant 1 : index
    %c0_29 = arith.constant 0 : index
    %c0_30 = arith.constant 0 : index
    %63 = vector.load %arg4[%c0_28, %c1, %c0_29, %c0_30] : memref<1x4x8x128xf32, #tpu.memory_space<vmem>>, vector<1x1x8x128xf32>
    %64 = vector.shape_cast %63 : vector<1x1x8x128xf32> to vector<8x128xf32>
    %65 = arith.addf %64, %54 : vector<8x128xf32>
    %c0_31 = arith.constant 0 : index
    %c1_32 = arith.constant 1 : index
    %c0_33 = arith.constant 0 : index
    %c0_34 = arith.constant 0 : index
    %66 = vector.load %arg4[%c0_31, %c1_32, %c0_33, %c0_34] : memref<1x4x8x128xf32, #tpu.memory_space<vmem>>, vector<1x1x8x128xf32>
    %67 = vector.shape_cast %66 : vector<1x1x8x128xf32> to vector<8x128xf32>
    %68 = vector.shape_cast %65 : vector<8x128xf32> to vector<1x1x8x128xf32>
    tpu.vector_store %arg4[%c0_31, %c1_32, %c0_33, %c0_34], %68 {strides = array<i32>} : memref<1x4x8x128xf32, #tpu.memory_space<vmem>>, vector<1x1x8x128xf32>,
    %c0_35 = arith.constant 0 : index
    %c2 = arith.constant 2 : index
    %c0_36 = arith.constant 0 : index
    %c0_37 = arith.constant 0 : index
    %69 = vector.load %arg4[%c0_35, %c2, %c0_36, %c0_37] : memref<1x4x8x128xf32, #tpu.memory_space<vmem>>, vector<1x1x8x128xf32>
    %70 = vector.shape_cast %69 : vector<1x1x8x128xf32> to vector<8x128xf32>
    %71 = arith.addf %70, %55 : vector<8x128xf32>
    %c0_38 = arith.constant 0 : index
    %c2_39 = arith.constant 2 : index
    %c0_40 = arith.constant 0 : index
    %c0_41 = arith.constant 0 : index
    %72 = vector.load %arg4[%c0_38, %c2_39, %c0_40, %c0_41] : memref<1x4x8x128xf32, #tpu.memory_space<vmem>>, vector<1x1x8x128xf32>
    %73 = vector.shape_cast %72 : vector<1x1x8x128xf32> to vector<8x128xf32>
    %74 = vector.shape_cast %71 : vector<8x128xf32> to vector<1x1x8x128xf32>
    tpu.vector_store %arg4[%c0_38, %c2_39, %c0_40, %c0_41], %74 {strides = array<i32>} : memref<1x4x8x128xf32, #tpu.memory_space<vmem>>, vector<1x1x8x128xf32>,
    %c0_42 = arith.constant 0 : index
    %c3 = arith.constant 3 : index
    %c0_43 = arith.constant 0 : index
    %c0_44 = arith.constant 0 : index
    %75 = vector.load %arg4[%c0_42, %c3, %c0_43, %c0_44] : memref<1x4x8x128xf32, #tpu.memory_space<vmem>>, vector<1x1x8x128xf32>
    %76 = vector.shape_cast %75 : vector<1x1x8x128xf32> to vector<8x128xf32>
    %77 = arith.addf %76, %56 : vector<8x128xf32>
    %c0_45 = arith.constant 0 : index
    %c3_46 = arith.constant 3 : index
    %c0_47 = arith.constant 0 : index
    %c0_48 = arith.constant 0 : index
    %78 = vector.load %arg4[%c0_45, %c3_46, %c0_47, %c0_48] : memref<1x4x8x128xf32, #tpu.memory_space<vmem>>, vector<1x1x8x128xf32>
    %79 = vector.shape_cast %78 : vector<1x1x8x128xf32> to vector<8x128xf32>
    %80 = vector.shape_cast %77 : vector<8x128xf32> to vector<1x1x8x128xf32>
    tpu.vector_store %arg4[%c0_45, %c3_46, %c0_47, %c0_48], %80 {strides = array<i32>} : memref<1x4x8x128xf32, #tpu.memory_space<vmem>>, vector<1x1x8x128xf32>,
    return
  }
  func.func @transform_0(%arg0: i32, %arg1: i32) -> (i32, i32) {
    %c1_i32 = arith.constant 1 : i32
    %0 = arith.muli %arg0, %c1_i32 : i32
    %1 = arith.addi %0, %arg1 : i32
    %c0_i32 = arith.constant 0 : i32
    %c0_i32_0 = arith.constant 0 : i32
    return %1, %c0_i32 : i32, i32
  }
  func.func @transform_1(%arg0: i32, %arg1: i32) -> (i32, i32) {
    %c1_i32 = arith.constant 1 : i32
    %0 = arith.muli %arg0, %c1_i32 : i32
    %1 = arith.addi %0, %arg1 : i32
    %c0_i32 = arith.constant 0 : i32
    %c0_i32_0 = arith.constant 0 : i32
    return %1, %c0_i32 : i32, i32
  }
  func.func @transform_2(%arg0: i32, %arg1: i32) -> (i32, i32, i32, i32) {
    %c0_i32 = arith.constant 0 : i32
    %c0_i32_0 = arith.constant 0 : i32
    %c0_i32_1 = arith.constant 0 : i32
    %c0_i32_2 = arith.constant 0 : i32
    return %arg0, %c0_i32, %c0_i32_0, %c0_i32_1 : i32, i32, i32, i32
  }
}

</mosaic_0001>

<bundles_post_ra>
// kernel: tpu_custom_call.1
= control target key start
LH: loop header
LB: loop body
LE: loop exit
PB: predicated region body
PF: predicated region fallthrough
CT: control target
= control target key end

     0   :  { %7 = vsyncpa [#allocation3], 0  ;;  %s312_s0 = inlined_call_operand.hbm [shape: f32[16,128], index: 0, kind: input, shape index: {}]   ;;  %s313_s1 = inlined_call_operand.hbm [shape: f32[16,128], index: 1, kind: input, shape index: {}]   ;;  %s314_s2 = inlined_call_operand.hbm [shape: f32[1,4,8,128], index: 2, kind: output, shape index: {}]  }
   0x1   :  { %8 = vsyncpa [#allocation6], 0 }
   0x2   :  { %9 = vsyncpa [#allocation4], 0  ;;  %s273_s9 = smov [#allocation2]  }
   0x3   :  { %s19_s10 = sshll.u32 %s273_s9, 4  ;;  %s20_s10 = int_to_ptr.vmem [resolvable:$true] %s19_s10 }
   0x4   :  { %s215_s11 = scalar_lea.vmem %s20_s10, 256  ;;  %p220_p1 = scmp.lt.s32.totalorder %s20_s10, %s20_s10 }
   0x5   :  { %p216_p0 = scmp.ne.s32.totalorder %s20_s10, %s215_s11  ;;  %p221_p2 = scmp.lt.s32.totalorder %s215_s11, %s215_s11 }
   0x7   :  { %p222_p3 = por %p221_p2, %p220_p1 }
   0x9   :  { %p223_p4 = pnand %p222_p3, %p216_p0 }
   0xb   :  { %226 = shalt.err (!%p223_p4)
}
   0xc   :  { %s274_s12 = smov 128   ;;  %s275_s13 = smov 8  }
   0xd   :  { %25 = dma.hbm_to_vmem [thread:$0]  %s312_s0, 256, %s20_s10, [#allocation3], %s274_s12, %s274_s12, %s275_s13  }
   0xe   :  { %s276_s16 = smov [#allocation5]  }
   0xf   :  { %s35_s17 = sshll.u32 %s276_s16, 4  ;;  %s36_s17 = int_to_ptr.vmem [resolvable:$true] %s35_s17 }
  0x10   :  { %s235_s18 = scalar_lea.vmem %s36_s17, 256  ;;  %p240_p6 = scmp.lt.s32.totalorder %s36_s17, %s36_s17 }
  0x11   :  { %p236_p5 = scmp.ne.s32.totalorder %s36_s17, %s235_s18  ;;  %p241_p7 = scmp.lt.s32.totalorder %s235_s18, %s235_s18 }
  0x13   :  { %p242_p8 = por %p241_p7, %p240_p6 }
  0x15   :  { %p243_p9 = pnand %p242_p8, %p236_p5 }
  0x17   :  { %246 = shalt.err (!%p243_p9)
}
  0x18   :  { %41 = dma.hbm_to_vmem [thread:$0]  %s313_s1, 256, %s36_s17, [#allocation6], %s274_s12, %s274_s12, %s275_s13  }
  0x19   :  { %267 = dma.done.wait [#allocation3], 256  }
  0x1a   :  { %268 = vsyncadd [#allocation3], 4294967040 }
  0x1b   :  { %269 = dma.done.wait [#allocation6], 256  }
  0x1c   :  { %270 = vsyncadd [#allocation6], 4294967040  ;;  %v60_v0 = vld [vmem:[#allocation2] sm:$0xff]  ;;  %v61_v1 = vld [vmem:[#allocation2 + $0x8] sm:$0xff]  ;;  %v277_v54 = vmov 0.0   ;;  %s278_s0 = smov [#allocation7]  }
  0x1d   :  { %v76_v2 = vand.u32 2147483647, %v60_v0  ;;  %v77_v3 = vand.u32 2147483647, %v61_v1  ;;  %v106_v17 = vsub.f32 0.0, %v60_v0  ;;  %v107_v19 = vsub.f32 0.0, %v61_v1 }
  0x1e   :  { %v102_v23 = vmin.f32 %v60_v0, 0.0  ;;  %v103_v27 = vmin.f32 %v61_v1, 0.0  ;;  %v62_v52 = vld [vmem:[#allocation5] sm:$0xff]  ;;  %v63_v53 = vld [vmem:[#allocation5 + $0x8] sm:$0xff]  ;;  %s168_s1 = sshll.u32 %s278_s0, 4  ;;  %s169_s1 = int_to_ptr.vmem [resolvable:$true] %s168_s1 }
  0x1f   :  { %v78_v4 = vsub.f32 0.0, %v76_v2  ;;  %v79_v5 = vsub.f32 0.0, %v77_v3  ;;  %v108_v24 = vmin.f32 %v106_v17, 0.0  ;;  %v109_v28 = vmin.f32 %v107_v19, 0.0  ;;  %s247_s21 = scalar_lea.vmem %s169_s1, 512  ;;  %p252_p11 = scmp.lt.s32.totalorder %s169_s1, %s169_s1 }
  0x20   :  { %vm64_vm2 = vcmp.eq.f32.partialorder %v62_v52, 1.0  ;;  %vm65_vm3 = vcmp.eq.f32.partialorder %v63_v53, 1.0  ;;  %vm70_vm4 = vcmp.eq.f32.partialorder %v62_v52, 0.0  ;;  %vm71_vm5 = vcmp.eq.f32.partialorder %v63_v53, 0.0  ;;  %p248_p10 = scmp.ne.s32.totalorder %s169_s1, %s247_s21  ;;  %p253_p12 = scmp.lt.s32.totalorder %s247_s21, %s247_s21 }
  0x21   :  { %v80_v6 = vmul.f32 1.442695, %v78_v4  ;;  %v82_v7 = vmul.f32 1.442695, %v79_v5  ;;  %v181_v55 = vsel %vm64_vm2, 1.0, %v277_v54  ;;  %v182_v56 = vsel %vm65_vm3, 1.0, %v277_v54 }
  0x22   :  { %v183_v58 = vsel %vm70_vm4, 1.0, %v277_v54  ;;  %v184_v61 = vsel %vm71_vm5, 1.0, %v277_v54  ;;  %p254_p13 = por %p253_p12, %p252_p11 }
  0x23   :  { %191 = vpow2.f32 %v80_v6 }
  0x24   :  { %193 = vpow2.f32 %v82_v7  ;;  %p255_p0 = pnand %p254_p13, %p248_p10 }
  0x30   :  { %v192_v8 = vpop.eup %191 }
  0x31   :  { %v194_v9 = vpop.eup %193  ;;  %v84_v10 = vadd.f32 1.0, %v192_v8  ;;  %v87_v12 = vmul.f32 -0.5, %v192_v8  ;;  %v90_v15 = vand.u32 2147483647, %v192_v8 }
  0x32   :  { %v93_v11 = vadd.f32 1.0, %v194_v9  ;;  %v96_v13 = vmul.f32 -0.5, %v194_v9  ;;  %v99_v18 = vand.u32 2147483647, %v194_v9 }
  0x33   :  { %195 = vlog2.f32 %v84_v10  ;;  %v88_v14 = vadd.f32 1.0, %v87_v12  ;;  %vm91_vm0 = vcmp.lt.f32.partialorder %v90_v15, 0.0004427343 }
  0x34   :  { %197 = vlog2.f32 %v93_v11  ;;  %v97_v16 = vadd.f32 1.0, %v96_v13  ;;  %vm100_vm1 = vcmp.lt.f32.partialorder %v99_v18, 0.0004427343 }
  0x35   :  { %v89_v20 = vmul.f32 %v192_v8, %v88_v14 }
  0x36   :  { %v98_v22 = vmul.f32 %v194_v9, %v97_v16 }
  0x40   :  { %v196_v21 = vpop.eup %195 }
  0x41   :  { %v198_v25 = vpop.eup %197  ;;  %v86_v26 = vmul.f32 0.6931472, %v196_v21 }
  0x42   :  { %v95_v29 = vmul.f32 0.6931472, %v198_v25 }
  0x43   :  { %v92_v30 = vsel %vm91_vm0, %v89_v20, %v86_v26 }
  0x44   :  { %v101_v31 = vsel %vm100_vm1, %v98_v22, %v95_v29  ;;  %v104_v32 = vsub.f32 %v102_v23, %v92_v30  ;;  %v110_v33 = vsub.f32 %v108_v24, %v92_v30 }
  0x45   :  { %v105_v34 = vsub.f32 %v103_v27, %v101_v31  ;;  %v111_v35 = vsub.f32 %v109_v28, %v101_v31 }
  0x46   :  { %v112_v36 = vmax.f32 %v104_v32, -13.815511  ;;  %v116_v37 = vmax.f32 %v110_v33, -13.815511 }
  0x47   :  { %v113_v38 = vmax.f32 %v105_v34, -13.815511  ;;  %v117_v39 = vmax.f32 %v111_v35, -13.815511 }
  0x48   :  { %v114_v40 = vmin.f32 %v112_v36, -1.0000005e-06  ;;  %v118_v41 = vmin.f32 %v116_v37, -1.0000005e-06 }
  0x49   :  { %v115_v42 = vmin.f32 %v113_v38, -1.0000005e-06  ;;  %v119_v43 = vmin.f32 %v117_v39, -1.0000005e-06 }
  0x4a   :  { %v120_v44 = vmul.f32 2.0, %v118_v41  ;;  %v128_v45 = vmul.f32 2.0, %v114_v40 }
  0x4b   :  { %v121_v46 = vmul.f32 2.0, %v119_v43  ;;  %v129_v47 = vmul.f32 2.0, %v115_v42 }
  0x4c   :  { %v122_v48 = vmul.f32 1.442695, %v120_v44  ;;  %v130_v49 = vmul.f32 1.442695, %v128_v45 }
  0x4d   :  { %v124_v50 = vmul.f32 1.442695, %v121_v46  ;;  %v132_v51 = vmul.f32 1.442695, %v129_v47 }
  0x4e   :  { %199 = vpow2.f32 %v122_v48 }
  0x4f   :  { %201 = vpow2.f32 %v124_v50 }
  0x50   :  { %203 = vpow2.f32 %v130_v49 }
  0x51   :  { %205 = vpow2.f32 %v132_v51 }
  0x5b   :  { %v200_v57 = vpop.eup %199 }
  0x5c   :  { %v202_v59 = vpop.eup %201  ;;  %v126_v60 = vmul.f32 %v200_v57, %v181_v55 }
  0x5d   :  { %v204_v62 = vpop.eup %203  ;;  %v127_v63 = vmul.f32 %v202_v59, %v182_v56 }
  0x5e   :  { %v206_v0 = vpop.eup %205  ;;  %v136_v1 = vmul.f32 %v126_v60, %v114_v40  ;;  %v134_v2 = vmul.f32 %v204_v62, %v183_v58 }
  0x5f   :  { %v137_v3 = vmul.f32 %v127_v63, %v115_v42  ;;  %v139_v4 = vadd.f32 %v127_v63, %v126_v60  ;;  %v135_v5 = vmul.f32 %v206_v0, %v184_v61 }
  0x60   :  { %v140_v6 = vmul.f32 %v134_v2, %v110_v33 }
  0x61   :  { %v138_v7 = vadd.f32 %v137_v3, %v136_v1  ;;  %v141_v8 = vmul.f32 %v135_v5, %v111_v35  ;;  %v143_v9 = vadd.f32 %v135_v5, %v134_v2  ;;  %154 = vst [vmem:[#allocation7 + $0x8] sm:$0xff] %v139_v4 }
  0x63   :  { %v142_v10 = vadd.f32 %v141_v8, %v140_v6  ;;  %150 = vst [vmem:[#allocation7] sm:$0xff] %v138_v7  ;;  %162 = vst [vmem:[#allocation7 + $0x18] sm:$0xff] %v143_v9 }
  0x65   :  { %158 = vst [vmem:[#allocation7 + $0x10] sm:$0xff] %v142_v10 }
  0x66   :  { %258 = shalt.err (!%p255_p0)
}
  0x67   :  { %174 = dma.vmem_to_hbm [thread:$0]  %s169_s1, 512, %s314_s2, [#allocation4], %s274_s12, %s274_s12, %s275_s13  }
  0x68   :  { %271 = dma.done.wait [#allocation4], 512  }
  0x69   :  { %272 = vsyncadd [#allocation4], 4294966784 }
  0x6a   :  { %178 = vsyncpa [#allocation3], 1 }
  0x6b   :  { %179 = vsyncpa [#allocation6], 1 }
  0x6c   :  { %180 = vsyncpa [#allocation4], 1 }

</bundles_post_ra>
